<compile_context>
chip_gen: v5e
topology: v5e:2x2
jax: 0.10.0
libtpu: 0.0.40
codegen_flags: <defaults>
</compile_context>

<pallas_src>
import math

import jax
import jax.numpy as jnp
from jax.experimental import pallas as pl
from jax.experimental.pallas import tpu as pltpu


# Preferred (maximum) tile sizes; multiples of (sublane, 128).
_TM = 512     # output rows per tile
_TN = 512     # output cols per tile (multiple of 128 -> lane-dense, unmasked vst)
_TK = 1024    # contraction depth per tile (fewer accumulator RMW passes)

# Below this many MACs the fixed pallas_call overhead dominates; let XLA fuse.
_MIN_PALLAS_MACS = 1 << 24


def _round_up(v: int, m: int) -> int:
    return ((v + m - 1) // m) * m


def _sublane(dtype) -> int:
    """Second-minor layout granule for a dtype (8 f32 / 16 bf16 / 32 int8)."""
    return max(8, 32 // jnp.dtype(dtype).itemsize)


def _vmem_budget_bytes() -> int:
    """~75% of this generation's per-core VMEM (fallback: 64 MiB physical)."""
    cap = 64 * 2**20
    try:
        info = pltpu.get_tpu_info()
        cap = int(getattr(info, "vmem_capacity_bytes", cap)) or cap
    except Exception:
        pass
    return cap * 3 // 4


def _kn_tiles(d_in: int, d_out: int):
    """K/N tile sizes derived from the parameter shape only (stable across calls)."""
    tk = min(_TK, _round_up(d_in, 128))
    tn = min(_TN, _round_up(d_out, 128))
    return tk, tn


def prepare_linear_params(weight, bias, compute_dtype=None):
    """One-time (per-parameter) prep, hoisted out of the per-call path.

    Transposes nn.Linear's [D_out, D_in] weight to the MXU-canonical
    [D_in, D_out] (K, N) layout, optionally casts to a narrower compute dtype
    (e.g. bf16 for v6e/v7x MXU peak), and zero-pads K/N up to the tile grid.
    """
    d_out, d_in = weight.shape
    if compute_dtype is None:
        compute_dtype = weight.dtype
    compute_dtype = jnp.dtype(compute_dtype)

    tk, tn = _kn_tiles(d_in, d_out)
    k_pad = _round_up(d_in, tk)
    n_pad = _round_up(d_out, tn)

    w_t = jnp.asarray(weight, compute_dtype).T                      # [K, N]
    if (k_pad, n_pad) != w_t.shape:
        w_t = jnp.pad(w_t, ((0, k_pad - d_in), (0, n_pad - d_out)))

    b2d = jnp.asarray(bias, jnp.float32).reshape(1, d_out)          # f32 bias
    if n_pad != d_out:
        b2d = jnp.pad(b2d, ((0, 0), (0, n_pad - d_out)))

    return dict(w_t=w_t, bias=b2d, d_in=d_in, d_out=d_out,
                k_pad=k_pad, n_pad=n_pad, tk=tk, tn=tn,
                compute_dtype=compute_dtype)


def _linear_kernel_acc(x_ref, w_ref, b_ref, o_ref, acc_ref):
    """Output dtype narrower than f32: accumulate in an f32 VMEM scratch."""
    k = pl.program_id(2)

    @pl.when(k == 0)
    def _init():
        acc_ref[...] = jnp.zeros_like(acc_ref)

    acc_ref[...] += jnp.dot(x_ref[...], w_ref[...],
                            preferred_element_type=jnp.float32)

    @pl.when(k == pl.num_programs(2) - 1)
    def _finalize():
        o_ref[...] = (acc_ref[...] + b_ref[...]).astype(o_ref.dtype)


def _linear_kernel_f32(x_ref, w_ref, b_ref, o_ref):
    """f32 output: accumulate directly into the resident output block
    (its block index ignores k) — saves tm*tn*4 B VMEM and a finalize copy."""
    k = pl.program_id(2)

    @pl.when(k == 0)
    def _init():
        o_ref[...] = jnp.zeros_like(o_ref)

    o_ref[...] += jnp.dot(x_ref[...], w_ref[...],
                          preferred_element_type=jnp.float32)

    @pl.when(k == pl.num_programs(2) - 1)
    def _finalize():
        o_ref[...] += b_ref[...]


def _linear_pallas_2d(x2d, params, out_dtype):
    """y2d = x2d @ W^T + b using the prepared (transposed, padded) params."""
    m = x2d.shape[0]
    d_in, d_out = params["d_in"], params["d_out"]
    k_pad, n_pad = params["k_pad"], params["n_pad"]
    tk, tn = params["tk"], params["tn"]
    cdt = params["compute_dtype"]

    x2d = x2d.astype(cdt)
    # Zero-pad the activation along K only when D_in isn't tile-aligned; the
    # weight's K padding is zeros, so the dot stays exact.
    if k_pad != d_in:
        x2d = jnp.pad(x2d, ((0, 0), (0, k_pad - d_in)))

    # Dtype-aware sublane rounding for the M tile. Small-M problems naturally
    # get tm == M, so the weight is streamed exactly once (the dominant
    # operand for inference-sized M); large-M problems get tm = 512, which
    # bounds x re-reads for training-sized M.
    sub = _sublane(cdt)
    tm = min(_TM, _round_up(m, sub))

    grid_i = pl.cdiv(m, tm)
    grid_j = n_pad // tn

    # v7x has 2 TensorCores; make sure there are >=2 parallel (i, j) blocks.
    if grid_i * grid_j < 2:
        if tn >= 256 and tn % 256 == 0:
            tn //= 2
            grid_j = n_pad // tn
        elif m > sub:
            tm = _round_up(max(sub, tm // 2), sub)
            grid_i = pl.cdiv(m, tm)

    out_itemsize = jnp.dtype(out_dtype).itemsize
    c_itemsize = cdt.itemsize
    use_scratch = jnp.dtype(out_dtype) != jnp.float32

    def _working_set(tm_, tn_, tk_):
        ws = 2 * (tm_ * tk_ + tk_ * tn_) * c_itemsize   # double-buffered x, W
        ws += 2 * tn_ * 4                               # double-buffered bias
        ws += 2 * tm_ * tn_ * out_itemsize              # double-buffered out
        if use_scratch:
            ws += tm_ * tn_ * 4                         # f32 accumulator
        return ws

    budget = _vmem_budget_bytes()
    while _working_set(tm, tn, tk) > budget and tk % 256 == 0:
        tk //= 2                                        # keeps tk a 128-multiple divisor of k_pad
    vmem_limit = int(min(budget, max(2 * _working_set(tm, tn, tk), 16 * 2**20)))

    grid = (grid_i, grid_j, k_pad // tk)

    # Bytes reflect actual re-reads: x streamed once per j block, W once per i block.
    bytes_accessed = (
        x2d.size * c_itemsize * grid_j
        + k_pad * n_pad * c_itemsize * grid_i
        + n_pad * 4
        + m * n_pad * out_itemsize
    )
    cost = pl.CostEstimate(flops=2 * m * n_pad * k_pad,
                           bytes_accessed=int(bytes_accessed),
                           transcendentals=0)

    kernel = _linear_kernel_acc if use_scratch else _linear_kernel_f32
    scratch = [pltpu.VMEM((tm, tn), jnp.float32)] if use_scratch else []

    # TODO(synk): if profiling shows exposed weight-tile DMA at large tn, add
    # pipeline_mode=pl.Buffered(3) on the weight BlockSpec.
    y_p = pl.pallas_call(
        kernel,
        out_shape=jax.ShapeDtypeStruct((m, n_pad), out_dtype),
        grid_spec=pltpu.PrefetchScalarGridSpec(
            num_scalar_prefetch=0,
            grid=grid,
            in_specs=[
                pl.BlockSpec((tm, tk), lambda i, j, kk: (i, kk)),   # x   [M, K]
                pl.BlockSpec((tk, tn), lambda i, j, kk: (kk, j)),   # W^T [K, N]
                pl.BlockSpec((1, tn), lambda i, j, kk: (0, j)),     # bias [1, N]
            ],
            out_specs=pl.BlockSpec((tm, tn), lambda i, j, kk: (i, j)),
            scratch_shapes=scratch,
        ),
        compiler_params=pltpu.CompilerParams(
            dimension_semantics=("parallel", "parallel", "arbitrary"),
            vmem_limit_bytes=vmem_limit,
        ),
        cost_estimate=cost,
    )(x2d, params["w_t"], params["bias"])

    if n_pad != d_out:
        y_p = y_p[:, :d_out]
    return y_p


def linear_query_forward_prepared(x, params):
    """LinearQuery.forward with pre-prepared (transposed / padded) params."""
    d_in, d_out = params["d_in"], params["d_out"]
    lead = x.shape[:-1]
    x2d = x.reshape(-1, d_in)
    y2d = _linear_pallas_2d(x2d, params, x.dtype)
    aux_loss = 0.0
    return y2d.reshape(*lead, d_out), aux_loss


def linear_query_forward(x, weight, bias, *, compute_dtype=None,
                         force_pallas=False):
    """Pallas implementation of LinearQuery.forward.

    Args:
      x:      [..., D_in] input.
      weight: [D_out, D_in] (PyTorch nn.Linear convention).
      bias:   [D_out].
      compute_dtype: optional narrower MXU dtype (e.g. jnp.bfloat16).
      force_pallas: run the Pallas kernel even for tiny problems.

    Returns:
      (y, aux_loss) with y of shape [..., D_out] and aux_loss == 0.0.
    """
    d_out, d_in = weight.shape
    lead = x.shape[:-1]
    x2d = x.reshape(-1, d_in)
    m = x2d.shape[0]

    if not force_pallas and m * d_in * d_out < _MIN_PALLAS_MACS:
        # Tiny problem: fixed pallas_call overhead dominates; let XLA fuse it.
        y2d = x2d @ weight.T + bias
        return y2d.reshape(*lead, d_out), 0.0

    params = prepare_linear_params(weight, bias, compute_dtype)
    y2d = _linear_pallas_2d(x2d, params, x.dtype)
    return y2d.reshape(*lead, d_out), 0.0


def init_linear_params(key, d_in, d_out, dtype=jnp.float32):
    """Deterministic init matching nn.Linear's kaiming-uniform scheme."""
    kw, kb = jax.random.split(key)
    bound = 1.0 / math.sqrt(d_in)
    weight = jax.random.uniform(kw, (d_out, d_in), dtype, -bound, bound)
    bias = jax.random.uniform(kb, (d_out,), dtype, -bound, bound)
    return weight, bias


if __name__ == "__main__":
    # --- Main demo: f32, tile-aligned shapes, hoisted parameter prep. -------
    B, S, D_IN, D_OUT = 2, 128, 256, 512
    key = jax.random.PRNGKey(0)
    kx, kp = jax.random.split(key)
    x = jax.random.normal(kx, (B, S, D_IN), dtype=jnp.float32)
    weight, bias = init_linear_params(kp, D_IN, D_OUT)

    params = prepare_linear_params(weight, bias)          # one-time prep
    y, aux_loss = linear_query_forward_prepared(x, params)
    y = jax.block_until_ready(y)

    y_ref = x @ weight.T + bias
    assert y.shape == (B, S, D_OUT)
    assert aux_loss == 0.0
    assert jnp.allclose(y, y_ref, atol=1e-3, rtol=1e-3)

    # --- bf16 compute path (f32 accumulation, f32 output). ------------------
    params_bf16 = prepare_linear_params(weight, bias, compute_dtype=jnp.bfloat16)
    y_bf16, _ = linear_query_forward_prepared(x, params_bf16)
    y_bf16 = jax.block_until_ready(y_bf16)
    assert jnp.allclose(y_bf16, y_ref, atol=5e-2, rtol=5e-2)

    # --- Tiny, non-128-aligned shapes forced through Pallas: exercises the
    #     per-call K zero-pad of x, the output column slice, and the tile
    #     split that creates >=2 parallel blocks. ----------------------------
    B2, S2, DI2, DO2 = 2, 8, 32, 64
    kx2, kp2 = jax.random.split(jax.random.PRNGKey(1))
    x2 = jax.random.normal(kx2, (B2, S2, DI2), dtype=jnp.float32)
    w2, b2 = init_linear_params(kp2, DI2, DO2)
    y2, aux2 = linear_query_forward(x2, w2, b2, force_pallas=True)
    y2 = jax.block_until_ready(y2)
    assert y2.shape == (B2, S2, DO2)
    assert aux2 == 0.0
    assert jnp.allclose(y2, x2 @ w2.T + b2, atol=1e-3, rtol=1e-3)

    print("KERNEL_OK")
</pallas_src>

<mosaic_0001>
module attributes {stable_mosaic.version = 11 : i64} {
  func.func @_linear_kernel_f32(%arg0: i32, %arg1: i32, %arg2: i32, %arg3: memref<256x256xf32, #tpu.memory_space<vmem>>, %arg4: memref<256x256xf32, #tpu.memory_space<vmem>>, %arg5: memref<1x256xf32, #tpu.memory_space<vmem>>, %arg6: memref<256x256xf32, #tpu.memory_space<vmem>>) attributes {dimension_semantics = [#tpu.dimension_semantics<parallel>, #tpu.dimension_semantics<parallel>, #tpu.dimension_semantics<arbitrary>], iteration_bounds = array<i64: 1, 2, 1>, scalar_prefetch = 0 : i64, scratch_operands = 0 : i64, tpu.core_type = #tpu.core_type<tc>, window_params = [{transform_indices = @transform_0, window_bounds = array<i64: 256, 256>}, {transform_indices = @transform_1, window_bounds = array<i64: 256, 256>}, {transform_indices = @transform_2, window_bounds = array<i64: 1, 256>}, {transform_indices = @transform_3, window_bounds = array<i64: 256, 256>}]} {
    %c0_i32 = arith.constant 0 : i32
    %0 = arith.cmpi eq, %arg2, %c0_i32 : i32
    %1 = arith.extui %0 : i1 to i32
    %c0_i32_0 = arith.constant 0 : i32
    %2 = arith.cmpi ne, %1, %c0_i32_0 : i32
    scf.if %2 {
      %cst_10 = arith.constant 0.000000e+00 : f32
      %12 = vector.broadcast %cst_10 : f32 to vector<256x256xf32>
      %c0_11 = arith.constant 0 : index
      %c0_12 = arith.constant 0 : index
      %13 = vector.load %arg6[%c0_11, %c0_12] : memref<256x256xf32, #tpu.memory_space<vmem>>, vector<256x256xf32>
      tpu.vector_store %arg6[%c0_11, %c0_12], %12 {strides = array<i32>} : memref<256x256xf32, #tpu.memory_space<vmem>>, vector<256x256xf32>,
    } else {
    }
    %c0 = arith.constant 0 : index
    %c0_1 = arith.constant 0 : index
    %3 = vector.load %arg6[%c0, %c0_1] : memref<256x256xf32, #tpu.memory_space<vmem>>, vector<256x256xf32>
    %c0_2 = arith.constant 0 : index
    %c0_3 = arith.constant 0 : index
    %4 = vector.load %arg3[%c0_2, %c0_3] : memref<256x256xf32, #tpu.memory_space<vmem>>, vector<256x256xf32>
    %c0_4 = arith.constant 0 : index
    %c0_5 = arith.constant 0 : index
    %5 = vector.load %arg4[%c0_4, %c0_5] : memref<256x256xf32, #tpu.memory_space<vmem>>, vector<256x256xf32>
    %cst = arith.constant dense<0.000000e+00> : vector<256x256xf32>
    %6 = tpu.matmul %4, %5, %cst {dimension_numbers = #tpu.dot_dimension_numbers<[1], [0], [0], [1], [0, 0, 1, 1], [], []>} : vector<256x256xf32>, vector<256x256xf32>, vector<256x256xf32> -> vector<256x256xf32>
    %7 = arith.addf %3, %6 : vector<256x256xf32>
    %c0_6 = arith.constant 0 : index
    %c0_7 = arith.constant 0 : index
    %8 = vector.load %arg6[%c0_6, %c0_7] : memref<256x256xf32, #tpu.memory_space<vmem>>, vector<256x256xf32>
    tpu.vector_store %arg6[%c0_6, %c0_7], %7 {strides = array<i32>} : memref<256x256xf32, #tpu.memory_space<vmem>>, vector<256x256xf32>,
    %c0_i32_8 = arith.constant 0 : i32
    %9 = arith.cmpi eq, %arg2, %c0_i32_8 : i32
    %10 = arith.extui %9 : i1 to i32
    %c0_i32_9 = arith.constant 0 : i32
    %11 = arith.cmpi ne, %10, %c0_i32_9 : i32
    scf.if %11 {
      %c0_10 = arith.constant 0 : index
      %c0_11 = arith.constant 0 : index
      %12 = vector.load %arg6[%c0_10, %c0_11] : memref<256x256xf32, #tpu.memory_space<vmem>>, vector<256x256xf32>
      %c0_12 = arith.constant 0 : index
      %c0_13 = arith.constant 0 : index
      %13 = vector.load %arg5[%c0_12, %c0_13] : memref<1x256xf32, #tpu.memory_space<vmem>>, vector<1x256xf32>
      %14 = vector.broadcast %13 : vector<1x256xf32> to vector<256x256xf32>
      %15 = arith.addf %12, %14 : vector<256x256xf32>
      %c0_14 = arith.constant 0 : index
      %c0_15 = arith.constant 0 : index
      %16 = vector.load %arg6[%c0_14, %c0_15] : memref<256x256xf32, #tpu.memory_space<vmem>>, vector<256x256xf32>
      tpu.vector_store %arg6[%c0_14, %c0_15], %15 {strides = array<i32>} : memref<256x256xf32, #tpu.memory_space<vmem>>, vector<256x256xf32>,
    } else {
    }
    return
  }
  func.func @transform_0(%arg0: i32, %arg1: i32, %arg2: i32) -> (i32, i32) {
    %c0_i32 = arith.constant 0 : i32
    return %arg0, %arg2 : i32, i32
  }
  func.func @transform_1(%arg0: i32, %arg1: i32, %arg2: i32) -> (i32, i32) {
    %c0_i32 = arith.constant 0 : i32
    return %arg2, %arg1 : i32, i32
  }
  func.func @transform_2(%arg0: i32, %arg1: i32, %arg2: i32) -> (i32, i32) {
    %c0_i32 = arith.constant 0 : i32
    %c0_i32_0 = arith.constant 0 : i32
    return %c0_i32, %arg1 : i32, i32
  }
  func.func @transform_3(%arg0: i32, %arg1: i32, %arg2: i32) -> (i32, i32) {
    %c0_i32 = arith.constant 0 : i32
    return %arg0, %arg1 : i32, i32
  }
}

</mosaic_0001>

<bundles_post_ra>
// kernel: tpu_custom_call.1
= control target key start
LH: loop header
LB: loop body
LE: loop exit
PB: predicated region body
PF: predicated region fallthrough
CT: control target
= control target key end

     0   :  { %s2170_s0 = inlined_call_operand.hbm [shape: f32[256,256], index: 0, kind: input, shape index: {}]   ;;  %s2171_s1 = inlined_call_operand.hbm [shape: f32[256,512], index: 1, kind: input, shape index: {}]   ;;  %s2172_s2 = inlined_call_operand.hbm [shape: f32[1,512], index: 2, kind: input, shape index: {}]   ;;  %s2173_s3 = inlined_call_operand.hbm [shape: f32[256,512], index: 3, kind: output, shape index: {}]  }
   0x1   :  { %2176 = sst [smem:[#allocation12_spill]] %s2170_s0 }
   0x2   :  { %2177 = sst [smem:[#allocation13_spill]] %s2171_s1 }
   0x3   :  { %8 = vsyncpa [#allocation3], 0 }
   0x4   :  { %9 = vsyncpa [#allocation6], 0 }
   0x5   :  { %11 = vsyncpa [#allocation6 + $0x1], 0 }
   0x6   :  { %12 = vsyncpa [#allocation4], 0 }
   0x7   :  { %14 = vsyncpa [#allocation4 + $0x1], 0  ;;  %s1789_s12 = smov 0   ;;  %s1791_s13 = smov 0  }
   0x8   :  { %s1793_s14 = smov 0   ;;  %s1795_s15 = smov 0  }
   0x9   :  { %s1797_s16 = smov 0   ;;  %s1799_s17 = smov 0  }
   0xa LB: > { %s35_s18 = sadd.s32 1, %s1756_s16  ;;  %s76_s19 = sadd.s32 1, %s1748_s14  ;;  %s1760_s17 = sphi %s1799_s17, %s20_s17   ;;  %s1756_s16 = sphi %s1797_s16, %s2192_s16   ;;  %s1752_s15 = sphi %s1795_s15, %s2191_s15   ;;  %s1748_s14 = sphi %s1793_s14, %s2190_s14   ;;  %s1744_s13 = sphi %s1791_s13, %s2189_s13   ;;  %s1740_s12 = sphi %s1789_s12, %s2188_s12  }
   0xb   : > { %p37_p0 = scmp.ge.s32.totalorder %s35_s18, 2  ;;  %p83_p1 = scmp.ne.s32.totalorder %s1748_s14, %s1744_s13 }
   0xc   : > { %p84_p2 = scmp.eq.s32.totalorder %s1760_s17, 0  ;;  %p1481_p4 = scmp.ge.s32.totalorder %s1760_s17, 2 }
   0xd   : > { %s2194_s18 = smov (%p37_p0, %s35_s18), 0  ;;  %p1525_p6 = scmp.lt.s32.totalorder %s1760_s17, 2 }
   0xe   : > { %p1829_p3 = por %p84_p2, %p83_p1  ;;  %s72_s21 = ssub.s32 %s1756_s16, %s2194_s18 }
   0xf   : > { %p74_p5 = scmp.eq.s32.totalorder %s72_s21, 0  ;;  %s187_s22 = sand.u32 1, %s1760_s17  }
  0x10   : > { %s189_s23 = sand.u32 1, %s1748_s14   ;;  %s1497_s26 = sshll.u32 %s1756_s16, 4 }
  0x11   : > { %s1840_s24 = scalar_select %p74_p5, %s1748_s14, %s76_s19  }
  0x12   : > { %s1482_s25 = sshll.u32 %s189_s23, 9  ;;  %s2179_s1 = sld [smem:[#allocation13_spill]] }
  0x13   : > { %s191_s30 = scalar_lea.vmem [#allocation5], %s1482_s25  ;;  %p1850_p7 = pnand %p1525_p6, %p1829_p3 }
  0x14   : > { %s202_s4 = sshll.u32 %s191_s30, 4  ;;  %s1854_s7 = scalar_lea.sflag [#allocation6], %s187_s22  ;;  %s203_s4 = int_to_ptr.vmem [resolvable:$true] %s202_s4 }
  0x15   : > { %s1762_s8 = smov 512   ;;  %s2174_s9 = smov 256  }
  0x16   : > { %s2175_s10 = smov 16   ;;  %s1862_s11 = sadd.s32 4294967295, %s1760_s17  }
  0x17   : > { %s1478_s19 = sadd.s32 4294967294, %s1760_s17   ;;  %p89_p8 = scmp.ne.s32.totalorder %s1744_s13, %s1740_s12 }
  0x18   : > { %s199_s29 = scalar_lea.hbm %s2179_s1, %s1497_s26  ;;  %p90_p9 = scmp.eq.s32.totalorder %s1862_s11, 0 }
  0x19   : > { %s200_s5 = sshll.u32 %s199_s29, 4  ;;  %p141_p10 = scmp.eq.s32.totalorder %s1862_s11, 1  ;;  %s201_s5 = int_to_ptr.hbm [resolvable:$true] %s200_s5 }
  0x1a   : > { %1516 = dma.hbm_to_vmem [thread:$0]  (!%p1850_p7), %s201_s5, 8192, %s203_s4, %s1854_s7, %s1762_s8, %s2174_s9, %s2175_s10  }
  0x1b   : > { %p147_p11 = scmp.eq.s32.totalorder %s1478_s19, 1  ;;  %p1871_p12 = por %p90_p9, %p89_p8 }
  0x1c   : > { %p1479_p13 = scmp.ge.s32.totalorder %s1760_s17, 1  ;;  %p1879_p0 = por %p141_p10, %p83_p1 }
  0x1d   : > { %p1883_p2 = por %p147_p11, %p89_p8  ;;  %p154_p3 = scmp.lt.s32.totalorder %s1760_s17, 3 }
  0x1e   : > { %s2184_s0 = sld [smem:[#allocation12_spill]]  ;;  %s1765_s29 = smov [#allocation2]  }
  0x1f   : > { %p1891_p5 = pnand %p1479_p13, %p154_p3  ;;  %s173_s30 = sshll.u32 %s1765_s29, 4  ;;  %s174_s30 = int_to_ptr.vmem [resolvable:$true] %s173_s30 }
  0x20   : > { %s1485_s4 = sshll.u32 %s189_s23, 1  ;;  %s1486_s5 = sshll.u32 %s1756_s16, 1 }
  0x21   : > { %p1509_p1 = pneg %p1891_p5  ;;  %s220_s25 = scalar_lea.hbm %s2172_s2, %s1486_s5 }
  0x22   : > { %s222_s26 = sshll.u32 %s220_s25, 4  ;;  %s216_s9 = scalar_lea.vmem [#allocation7], %s1485_s4  ;;  %s223_s26 = int_to_ptr.hbm [resolvable:$true] %s222_s26 }
  0x23   : > { %p1510_p6 = pnand %p1509_p1, %p90_p9  ;;  %s224_s10 = sshll.u32 %s216_s9, 4  ;;  %s225_s10 = int_to_ptr.vmem [resolvable:$true] %s224_s10 }
  0x24   : > { %s171_s27 = sshll.u32 %s2184_s0, 4  ;;  %s2186_s0 = smov 16   ;;  %s172_s27 = int_to_ptr.hbm [resolvable:$true] %s171_s27 }
  0x25   : > { %s2187_s1 = smov 256   ;;  %233 = sbr.rel (%p1891_p5) target bundleno = 469 (0x1d5), region = 32 }
  0x26   : > { %1512 = dma.hbm_to_vmem [thread:$0]  (!%p1510_p6), %s172_s27, 8192, %s174_s30, [#allocation3], %s2187_s1, %s2187_s1, %s2186_s0  }
  0x27   : > { %1519 = dma.hbm_to_vmem [thread:$0]  (!%p1850_p7), %s223_s26, 32, %s225_s10, %s1854_s7  }
  0x2a   : > { %1727 = dma.done.wait (%p90_p9), [#allocation3], 8192  }
  0x2b   : > { %1729 = vsyncadd (%p90_p9), [#allocation3], 4294959104  ;;  %s240_s23 = sand.u32 1, %s1862_s11   ;;  %s1919_s9 = sand.u32 1, %s1744_s13  }
  0x2c   : > { %s1489_s0 = sshll.u32 %s1919_s9, 9  ;;  %s241_s1 = scalar_lea.sflag [#allocation6], %s240_s23 }
  0x2d   : > { %s1924_s6 = scalar_lea.vmem [#allocation5], %s1489_s0 }
  0x2e   : > { %1731 = dma.done.wait (%p1871_p12), %s241_s1, 8224  }
  0x2f   : > { %1733 = vsyncadd (%p1871_p12), %s241_s1, 4294959072  ;;  %v517_v0 = vld [vmem:[%s1924_s6 + $0xf8] sm:$0xff]  ;;  %v515_v2 = vld [vmem:[%s1924_s6 + $0xe8] sm:$0xff]  ;;  %s1490_s7 = sshll.u32 %s1919_s9, 1  ;;  %s2002_s11 = scalar_lea.vmem [#allocation8], %s1489_s0 }
  0x30   : > { %v549_v1 = vld [vmem:[%s1924_s6 + $0x1f8] sm:$0xff]  ;;  %776 = vmatpush.msra.mxu2 %v517_v0  ;;  %v547_v3 = vld [vmem:[%s1924_s6 + $0x1e8] sm:$0xff]  ;;  %v516_v6 = vld [vmem:[%s1924_s6 + $0xf0] sm:$0xff]  ;;  %s254_s10 = scalar_lea.vmem [#allocation7], %s1490_s7  ;;  %s1498_s20 = sshll.u32 %s1752_s15, 4 }
  0x31   : > { %889 = vmatpush.msra.mxu3 %v549_v1  ;;  %v513_v4 = vld [vmem:[%s1924_s6 + $0xd8] sm:$0xff]  ;;  %v548_v7 = vld [vmem:[%s1924_s6 + $0x1f0] sm:$0xff]  ;;  %v514_v8 = vld [vmem:[%s1924_s6 + $0xe0] sm:$0xff]  ;;  %550 = vmatpush.msra.mxu0 %v516_v6  ;;  %s1346_s29 = scalar_lea.hbm %s2173_s3, %s1498_s20  ;;  %s1347_s30 = sshll.u32 %s2002_s11, 4  ;;  %s1348_s30 = int_to_ptr.vmem [resolvable:$true] %s1347_s30 }
  0x32   : > { %v545_v5 = vld [vmem:[%s1924_s6 + $0x1d8] sm:$0xff]  ;;  %777 = vmatpush.msra.mxu2 %v515_v2  ;;  %v546_v9 = vld [vmem:[%s1924_s6 + $0x1e0] sm:$0xff]  ;;  %663 = vmatpush.msra.mxu1 %v548_v7  ;;  %v511_v10 = vld [vmem:[%s1924_s6 + $0xc8] sm:$0xff]  ;;  %s1349_s15 = sshll.u32 %s1346_s29, 4  ;;  %s1332_s4 = scalar_lea.sflag [#allocation4], %s1919_s9  ;;  %s1350_s15 = int_to_ptr.hbm [resolvable:$true] %s1349_s15 }
  0x33   : > { %890 = vmatpush.msra.mxu3 %v547_v3  ;;  %v543_v11 = vld [vmem:[%s1924_s6 + $0x1c8] sm:$0xff]  ;;  %v512_v12 = vld [vmem:[%s1924_s6 + $0xd0] sm:$0xff]  ;;  %551 = vmatpush.msra.mxu0 %v514_v8  ;;  %v509_v14 = vld [vmem:[%s1924_s6 + $0xb8] sm:$0xff]  ;;  %s1688_s5 = sshra.s32 %s1350_s15, 4  ;;  %s1694_s26 = scalar_lea.hbm %s2173_s3, 1024  ;;  %s1689_s5 = int_to_ptr.hbm [resolvable:$true] %s1688_s5 }
  0x34   : > { %778 = vmatpush.msra.mxu2 %v513_v4  ;;  %v544_v13 = vld [vmem:[%s1924_s6 + $0x1d0] sm:$0xff]  ;;  %664 = vmatpush.msra.mxu1 %v546_v9  ;;  %v541_v15 = vld [vmem:[%s1924_s6 + $0x1b8] sm:$0xff]  ;;  %v510_v16 = vld [vmem:[%s1924_s6 + $0xc0] sm:$0xff]  ;;  %s1690_s8 = scalar_lea.hbm %s1689_s5, 512  ;;  %p1695_p10 = scmp.lt.s32.totalorder %s1689_s5, %s2173_s3 }
  0x35   : > { %891 = vmatpush.msra.mxu3 %v545_v5  ;;  %v542_v17 = vld [vmem:[%s1924_s6 + $0x1c0] sm:$0xff]  ;;  %552 = vmatpush.msra.mxu0 %v512_v12  ;;  %v507_v18 = vld [vmem:[%s1924_s6 + $0xa8] sm:$0xff]  ;;  %v508_v20 = vld [vmem:[%s1924_s6 + $0xb0] sm:$0xff]  ;;  %p1691_p7 = scmp.ne.s32.totalorder %s1689_s5, %s1690_s8  ;;  %p1696_p11 = scmp.lt.s32.totalorder %s1694_s26, %s1690_s8 }
  0x36   : > { %779 = vmatpush.msra.mxu2 %v511_v10  ;;  %665 = vmatpush.msra.mxu1 %v544_v13  ;;  %v539_v19 = vld [vmem:[%s1924_s6 + $0x1a8] sm:$0xff]  ;;  %v540_v21 = vld [vmem:[%s1924_s6 + $0x1b0] sm:$0xff]  ;;  %v505_v22 = vld [vmem:[%s1924_s6 + $0x98] sm:$0xff] }
  0x37   : > { %892 = vmatpush.msra.mxu3 %v543_v11  ;;  %553 = vmatpush.msra.mxu0 %v510_v16  ;;  %v537_v23 = vld [vmem:[%s1924_s6 + $0x198] sm:$0xff]  ;;  %v506_v24 = vld [vmem:[%s1924_s6 + $0xa0] sm:$0xff]  ;;  %v503_v26 = vld [vmem:[%s1924_s6 + $0x88] sm:$0xff]  ;;  %p1692_p8 = pnand %p1691_p7, %p1879_p0  ;;  %p1697_p12 = por %p1696_p11, %p1695_p10 }
  0x38   : > { %780 = vmatpush.msra.mxu2 %v509_v14  ;;  %666 = vmatpush.msra.mxu1 %v542_v17  ;;  %v538_v25 = vld [vmem:[%s1924_s6 + $0x1a0] sm:$0xff]  ;;  %v535_v27 = vld [vmem:[%s1924_s6 + $0x188] sm:$0xff]  ;;  %v504_v28 = vld [vmem:[%s1924_s6 + $0x90] sm:$0xff] }
  0x39   : > { %893 = vmatpush.msra.mxu3 %v541_v15  ;;  %554 = vmatpush.msra.mxu0 %v508_v20  ;;  %v536_v29 = vld [vmem:[%s1924_s6 + $0x190] sm:$0xff]  ;;  %v501_v30 = vld [vmem:[%s1924_s6 + $0x78] sm:$0xff]  ;;  %v502_v32 = vld [vmem:[%s1924_s6 + $0x80] sm:$0xff]  ;;  %p1693_p9 = pneg %p1692_p8 }
  0x3a   : > { %781 = vmatpush.msra.mxu2 %v507_v18  ;;  %667 = vmatpush.msra.mxu1 %v540_v21  ;;  %v533_v31 = vld [vmem:[%s1924_s6 + $0x178] sm:$0xff]  ;;  %v534_v33 = vld [vmem:[%s1924_s6 + $0x180] sm:$0xff]  ;;  %v499_v34 = vld [vmem:[%s1924_s6 + $0x68] sm:$0xff] }
  0x3b   : > { %894 = vmatpush.msra.mxu3 %v539_v19  ;;  %555 = vmatpush.msra.mxu0 %v506_v24  ;;  %v531_v35 = vld [vmem:[%s1924_s6 + $0x168] sm:$0xff]  ;;  %v500_v36 = vld [vmem:[%s1924_s6 + $0x70] sm:$0xff]  ;;  %v497_v38 = vld [vmem:[%s1924_s6 + $0x58] sm:$0xff]  ;;  %p1698_p13 = pnand %p1697_p12, %p1693_p9 }
  0x3c   : > { %782 = vmatpush.msra.mxu2 %v505_v22  ;;  %668 = vmatpush.msra.mxu1 %v538_v25  ;;  %v532_v37 = vld [vmem:[%s1924_s6 + $0x170] sm:$0xff]  ;;  %v529_v39 = vld [vmem:[%s1924_s6 + $0x158] sm:$0xff]  ;;  %v498_v40 = vld [vmem:[%s1924_s6 + $0x60] sm:$0xff] }
  0x3d   : > { %895 = vmatpush.msra.mxu3 %v537_v23  ;;  %556 = vmatpush.msra.mxu0 %v504_v28  ;;  %v530_v41 = vld [vmem:[%s1924_s6 + $0x160] sm:$0xff]  ;;  %v495_v42 = vld [vmem:[%s1924_s6 + $0x48] sm:$0xff]  ;;  %v496_v44 = vld [vmem:[%s1924_s6 + $0x50] sm:$0xff] }
  0x3e   : > { %783 = vmatpush.msra.mxu2 %v503_v26  ;;  %669 = vmatpush.msra.mxu1 %v536_v29  ;;  %v527_v43 = vld [vmem:[%s1924_s6 + $0x148] sm:$0xff]  ;;  %v528_v45 = vld [vmem:[%s1924_s6 + $0x150] sm:$0xff]  ;;  %v493_v46 = vld [vmem:[%s1924_s6 + $0x38] sm:$0xff] }
  0x3f   : > { %896 = vmatpush.msra.mxu3 %v535_v27  ;;  %557 = vmatpush.msra.mxu0 %v502_v32  ;;  %v525_v47 = vld [vmem:[%s1924_s6 + $0x138] sm:$0xff]  ;;  %v494_v48 = vld [vmem:[%s1924_s6 + $0x40] sm:$0xff]  ;;  %v491_v50 = vld [vmem:[%s1924_s6 + $0x28] sm:$0xff] }
  0x40   : > { %784 = vmatpush.msra.mxu2 %v501_v30  ;;  %670 = vmatpush.msra.mxu1 %v534_v33  ;;  %v526_v49 = vld [vmem:[%s1924_s6 + $0x140] sm:$0xff]  ;;  %v523_v51 = vld [vmem:[%s1924_s6 + $0x128] sm:$0xff]  ;;  %v492_v52 = vld [vmem:[%s1924_s6 + $0x30] sm:$0xff] }
  0x41   : > { %897 = vmatpush.msra.mxu3 %v533_v31  ;;  %558 = vmatpush.msra.mxu0 %v500_v36  ;;  %v524_v53 = vld [vmem:[%s1924_s6 + $0x130] sm:$0xff]  ;;  %v489_v54 = vld [vmem:[%s1924_s6 + $0x18] sm:$0xff]  ;;  %v490_v56 = vld [vmem:[%s1924_s6 + $0x20] sm:$0xff] }
  0x42   : > { %785 = vmatpush.msra.mxu2 %v499_v34  ;;  %671 = vmatpush.msra.mxu1 %v532_v37  ;;  %v521_v55 = vld [vmem:[%s1924_s6 + $0x118] sm:$0xff]  ;;  %v522_v57 = vld [vmem:[%s1924_s6 + $0x120] sm:$0xff]  ;;  %v487_v58 = vld [vmem:[%s1924_s6 + $0x8] sm:$0xff] }
  0x43   : > { %898 = vmatpush.msra.mxu3 %v531_v35  ;;  %559 = vmatpush.msra.mxu0 %v498_v40  ;;  %v519_v59 = vld [vmem:[%s1924_s6 + $0x108] sm:$0xff]  ;;  %v422_v60 = vld [vmem:[#allocation2] sm:$0xff]  ;;  %v488_v62 = vld [vmem:[%s1924_s6 + $0x10] sm:$0xff] }
  0x44   : > { %786 = vmatpush.msra.mxu2 %v497_v38  ;;  %672 = vmatpush.msra.mxu1 %v530_v41  ;;  %v423_v61 = vld [vmem:[#allocation2 + $0x8] sm:$0xff]  ;;  %v520_v63 = vld [vmem:[%s1924_s6 + $0x110] sm:$0xff]  ;;  %v486_v0 = vld [vmem:[%s1924_s6] sm:$0xff] }
  0x45   : > { %899 = vmatpush.msra.mxu3 %v529_v39  ;;  %560 = vmatpush.msra.mxu0 %v496_v44  ;;  %v518_v1 = vld [vmem:[%s1924_s6 + $0x100] sm:$0xff]  ;;  %v424_v2 = vld [vmem:[#allocation2 + $0x10] sm:$0xff]  ;;  %v425_v3 = vld [vmem:[#allocation2 + $0x18] sm:$0xff] }
  0x46   : > { %787 = vmatpush.msra.mxu2 %v495_v42  ;;  %673 = vmatpush.msra.mxu1 %v528_v45  ;;  %v426_v4 = vld [vmem:[#allocation2 + $0x20] sm:$0xff]  ;;  %v427_v5 = vld [vmem:[#allocation2 + $0x28] sm:$0xff]  ;;  %v428_v6 = vld [vmem:[#allocation2 + $0x30] sm:$0xff] }
  0x47   : > { %900 = vmatpush.msra.mxu3 %v527_v43  ;;  %561 = vmatpush.msra.mxu0 %v494_v48  ;;  %v429_v7 = vld [vmem:[#allocation2 + $0x38] sm:$0xff]  ;;  %v430_v8 = vld [vmem:[#allocation2 + $0x40] sm:$0xff]  ;;  %v431_v9 = vld [vmem:[#allocation2 + $0x48] sm:$0xff] }
  0x48   : > { %788 = vmatpush.msra.mxu2 %v493_v46  ;;  %674 = vmatpush.msra.mxu1 %v526_v49  ;;  %v432_v10 = vld [vmem:[#allocation2 + $0x50] sm:$0xff]  ;;  %v433_v11 = vld [vmem:[#allocation2 + $0x58] sm:$0xff]  ;;  %v434_v12 = vld [vmem:[#allocation2 + $0x60] sm:$0xff] }
  0x49   : > { %901 = vmatpush.msra.mxu3 %v525_v47  ;;  %562 = vmatpush.msra.mxu0 %v492_v52  ;;  %v435_v13 = vld [vmem:[#allocation2 + $0x68] sm:$0xff]  ;;  %v436_v14 = vld [vmem:[#allocation2 + $0x70] sm:$0xff]  ;;  %v437_v15 = vld [vmem:[#allocation2 + $0x78] sm:$0xff] }
  0x4a   : > { %789 = vmatpush.msra.mxu2 %v491_v50  ;;  %675 = vmatpush.msra.mxu1 %v524_v53  ;;  %v438_v16 = vld [vmem:[#allocation2 + $0x80] sm:$0xff]  ;;  %v439_v17 = vld [vmem:[#allocation2 + $0x88] sm:$0xff]  ;;  %v440_v18 = vld [vmem:[#allocation2 + $0x90] sm:$0xff] }
  0x4b   : > { %902 = vmatpush.msra.mxu3 %v523_v51  ;;  %563 = vmatpush.msra.mxu0 %v490_v56  ;;  %v441_v19 = vld [vmem:[#allocation2 + $0x98] sm:$0xff]  ;;  %v442_v20 = vld [vmem:[#allocation2 + $0xa0] sm:$0xff]  ;;  %v443_v21 = vld [vmem:[#allocation2 + $0xa8] sm:$0xff] }
  0x4c   : > { %790 = vmatpush.msra.mxu2 %v489_v54  ;;  %676 = vmatpush.msra.mxu1 %v522_v57  ;;  %v444_v22 = vld [vmem:[#allocation2 + $0xb0] sm:$0xff]  ;;  %v445_v23 = vld [vmem:[#allocation2 + $0xb8] sm:$0xff]  ;;  %v446_v24 = vld [vmem:[#allocation2 + $0xc0] sm:$0xff] }
  0x4d   : > { %903 = vmatpush.msra.mxu3 %v521_v55  ;;  %564 = vmatpush.msra.mxu0 %v488_v62  ;;  %v447_v25 = vld [vmem:[#allocation2 + $0xc8] sm:$0xff]  ;;  %v448_v26 = vld [vmem:[#allocation2 + $0xd0] sm:$0xff]  ;;  %v449_v27 = vld [vmem:[#allocation2 + $0xd8] sm:$0xff] }
  0x4e   : > { %791 = vmatpush.msra.mxu2 %v487_v58  ;;  %677 = vmatpush.msra.mxu1 %v520_v63  ;;  %v450_v28 = vld [vmem:[#allocation2 + $0xe0] sm:$0xff]  ;;  %v451_v29 = vld [vmem:[#allocation2 + $0xe8] sm:$0xff]  ;;  %v452_v30 = vld [vmem:[#allocation2 + $0xf0] sm:$0xff] }
  0x4f   : > { %904 = vmatpush.msra.mxu3 %v519_v59  ;;  %792 = vmatmul.f32.vlgmr.msra.gmra.mxu2 %v422_v60  ;;  %v453_v31 = vld [vmem:[#allocation2 + $0xf8] sm:$0xff]  ;;  %v454_v32 = vld [vmem:[#allocation2 + $0x100] sm:$0xff]  ;;  %v455_v33 = vld [vmem:[#allocation2 + $0x108] sm:$0xff] }
  0x50   : > { %905 = vmatmul.f32.vlgmr.msra.gmra.mxu3 %v423_v61  ;;  %565 = vmatpush.msra.mxu0 %v486_v0  ;;  %v1197_v34 = vld [vmem:[%s254_s10] sm:$0x3]  ;;  %v456_v43 = vld [vmem:[#allocation2 + $0x110] sm:$0xff]  ;;  %v457_v44 = vld [vmem:[#allocation2 + $0x118] sm:$0xff] }
  0x51   : > { %678 = vmatpush.msra.mxu1 %v518_v1  ;;  %566 = vmatmul.f32.vlgmr.msra.gmra.mxu0 %v422_v60  ;;  %v1995_v38 = vperm.slane %v1197_v34, 0  ;;  %v1997_v42 = vperm.slane %v1197_v34, 1  ;;  %v458_v53 = vld [vmem:[#allocation2 + $0x120] sm:$0xff]  ;;  %v459_v54 = vld [vmem:[#allocation2 + $0x128] sm:$0xff]  ;;  %v460_v63 = vld [vmem:[#allocation2 + $0x130] sm:$0xff] }
  0x52   : > { %679 = vmatmul.f32.vlgmr.msra.gmra.mxu1 %v423_v61  ;;  %v461_v0 = vld [vmem:[#allocation2 + $0x138] sm:$0xff] }
  0x57   : > { %795 = vmatmul.f32.gmra.mxu2 %v424_v2 }
  0x58   : > { %908 = vmatmul.f32.gmra.mxu3 %v425_v3 }
  0x59   : > { %569 = vmatmul.f32.gmra.mxu0 %v424_v2 }
  0x5a   : > { %682 = vmatmul.f32.gmra.mxu1 %v425_v3 }
  0x5f   : > { %798 = vmatmul.f32.gmra.mxu2 %v426_v4 }
  0x60   : > { %911 = vmatmul.f32.gmra.mxu3 %v427_v5 }
  0x61   : > { %572 = vmatmul.f32.gmra.mxu0 %v426_v4 }
  0x62   : > { %685 = vmatmul.f32.gmra.mxu1 %v427_v5 }
  0x67   : > { %801 = vmatmul.f32.gmra.mxu2 %v428_v6 }
  0x68   : > { %914 = vmatmul.f32.gmra.mxu3 %v429_v7 }
  0x69   : > { %575 = vmatmul.f32.gmra.mxu0 %v428_v6 }
  0x6a   : > { %688 = vmatmul.f32.gmra.mxu1 %v429_v7 }
  0x6f   : > { %804 = vmatmul.f32.gmra.mxu2 %v430_v8 }
  0x70   : > { %917 = vmatmul.f32.gmra.mxu3 %v431_v9 }
  0x71   : > { %578 = vmatmul.f32.gmra.mxu0 %v430_v8 }
  0x72   : > { %691 = vmatmul.f32.gmra.mxu1 %v431_v9  ;;  %v462_v9 = vld [vmem:[#allocation2 + $0x140] sm:$0xff] }
  0x77   : > { %807 = vmatmul.f32.gmra.mxu2 %v432_v10 }
  0x78   : > { %920 = vmatmul.f32.gmra.mxu3 %v433_v11 }
  0x79   : > { %581 = vmatmul.f32.gmra.mxu0 %v432_v10  ;;  %v463_v10 = vld [vmem:[#allocation2 + $0x148] sm:$0xff] }
  0x7a   : > { %694 = vmatmul.f32.gmra.mxu1 %v433_v11 }
  0x7f   : > { %810 = vmatmul.f32.gmra.mxu2 %v434_v12 }
  0x80   : > { %923 = vmatmul.f32.gmra.mxu3 %v435_v13 }
  0x81   : > { %584 = vmatmul.f32.gmra.mxu0 %v434_v12 }
  0x82   : > { %697 = vmatmul.f32.gmra.mxu1 %v435_v13 }
  0x87   : > { %813 = vmatmul.f32.gmra.mxu2 %v436_v14 }
  0x88   : > { %926 = vmatmul.f32.gmra.mxu3 %v437_v15 }
  0x89   : > { %587 = vmatmul.f32.gmra.mxu0 %v436_v14 }
  0x8a   : > { %700 = vmatmul.f32.gmra.mxu1 %v437_v15 }
  0x8f   : > { %816 = vmatmul.f32.gmra.mxu2 %v438_v16 }
  0x90   : > { %929 = vmatmul.f32.gmra.mxu3 %v439_v17 }
  0x91   : > { %590 = vmatmul.f32.gmra.mxu0 %v438_v16 }
  0x92   : > { %703 = vmatmul.f32.gmra.mxu1 %v439_v17 }
  0x97   : > { %819 = vmatmul.f32.gmra.mxu2 %v440_v18 }
  0x98   : > { %932 = vmatmul.f32.gmra.mxu3 %v441_v19 }
  0x99   : > { %593 = vmatmul.f32.gmra.mxu0 %v440_v18 }
  0x9a   : > { %706 = vmatmul.f32.gmra.mxu1 %v441_v19  ;;  %v464_v19 = vld [vmem:[#allocation2 + $0x150] sm:$0xff] }
  0x9f   : > { %822 = vmatmul.f32.gmra.mxu2 %v442_v20 }
  0xa0   : > { %935 = vmatmul.f32.gmra.mxu3 %v443_v21 }
  0xa1   : > { %596 = vmatmul.f32.gmra.mxu0 %v442_v20  ;;  %v465_v20 = vld [vmem:[#allocation2 + $0x158] sm:$0xff] }
  0xa2   : > { %709 = vmatmul.f32.gmra.mxu1 %v443_v21 }
  0xa7   : > { %825 = vmatmul.f32.gmra.mxu2 %v444_v22 }
  0xa8   : > { %938 = vmatmul.f32.gmra.mxu3 %v445_v23 }
  0xa9   : > { %599 = vmatmul.f32.gmra.mxu0 %v444_v22 }
  0xaa   : > { %712 = vmatmul.f32.gmra.mxu1 %v445_v23 }
  0xaf   : > { %828 = vmatmul.f32.gmra.mxu2 %v446_v24 }
  0xb0   : > { %941 = vmatmul.f32.gmra.mxu3 %v447_v25 }
  0xb1   : > { %602 = vmatmul.f32.gmra.mxu0 %v446_v24 }
  0xb2   : > { %715 = vmatmul.f32.gmra.mxu1 %v447_v25 }
  0xb7   : > { %831 = vmatmul.f32.gmra.mxu2 %v448_v26 }
  0xb8   : > { %944 = vmatmul.f32.gmra.mxu3 %v449_v27 }
  0xb9   : > { %605 = vmatmul.f32.gmra.mxu0 %v448_v26 }
  0xba   : > { %718 = vmatmul.f32.gmra.mxu1 %v449_v27 }
  0xbf   : > { %834 = vmatmul.f32.gmra.mxu2 %v450_v28 }
  0xc0   : > { %947 = vmatmul.f32.gmra.mxu3 %v451_v29 }
  0xc1   : > { %608 = vmatmul.f32.gmra.mxu0 %v450_v28 }
  0xc2   : > { %721 = vmatmul.f32.gmra.mxu1 %v451_v29  ;;  %v466_v29 = vld [vmem:[#allocation2 + $0x160] sm:$0xff] }
  0xc7   : > { %837 = vmatmul.f32.gmra.mxu2 %v452_v30 }
  0xc8   : > { %950 = vmatmul.f32.gmra.mxu3 %v453_v31 }
  0xc9   : > { %611 = vmatmul.f32.gmra.mxu0 %v452_v30  ;;  %v467_v30 = vld [vmem:[#allocation2 + $0x168] sm:$0xff] }
  0xca   : > { %724 = vmatmul.f32.gmra.mxu1 %v453_v31 }
  0xce   : > { %v567_v35 = vpop.f32.mrf.mxu0 }
  0xcf   : > { %840 = vmatmul.f32.gmra.mxu2 %v454_v32  ;;  %v680_v36 = vpop.f32.mrf.mxu1 }
  0xd0   : > { %953 = vmatmul.f32.gmra.mxu3 %v455_v33  ;;  %v681_v37 = vadd.f32 %v680_v36, %v567_v35 }
  0xd1   : > { %614 = vmatmul.f32.gmra.mxu0 %v454_v32 }
  0xd2   : > { %v793_v39 = vpop.f32.mrf.mxu2  ;;  %727 = vmatmul.f32.gmra.mxu1 %v455_v33  ;;  %v1203_v45 = vadd.f32 %v1995_v38, %v681_v37 }
  0xd3   : > { %v906_v40 = vpop.f32.mrf.mxu3 }
  0xd4   : > { %v907_v41 = vadd.f32 %v906_v40, %v793_v39  ;;  %1267 = vst [vmem:[%s2002_s11] sm:$0xff] %v1203_v45  ;;  %v468_v40 = vld [vmem:[#allocation2 + $0x170] sm:$0xff] }
  0xd6   : > { %v1204_v46 = vadd.f32 %v1997_v42, %v907_v41  ;;  %v570_v47 = vpop.f32.mrf.mxu0  ;;  %v469_v41 = vld [vmem:[#allocation2 + $0x178] sm:$0xff] }
  0xd7   : > { %843 = vmatmul.f32.gmra.mxu2 %v456_v43  ;;  %v683_v48 = vpop.f32.mrf.mxu1 }
  0xd8   : > { %956 = vmatmul.f32.gmra.mxu3 %v457_v44  ;;  %1268 = vst [vmem:[%s2002_s11 + $0x8] sm:$0xff] %v1204_v46  ;;  %v684_v49 = vadd.f32 %v683_v48, %v570_v47 }
  0xd9   : > { %617 = vmatmul.f32.gmra.mxu0 %v456_v43 }
  0xda   : > { %v796_v50 = vpop.f32.mrf.mxu2  ;;  %730 = vmatmul.f32.gmra.mxu1 %v457_v44  ;;  %v1205_v55 = vadd.f32 %v1995_v38, %v684_v49 }
  0xdb   : > { %v909_v51 = vpop.f32.mrf.mxu3 }
  0xdc   : > { %v910_v52 = vadd.f32 %v909_v51, %v796_v50  ;;  %1269 = vst [vmem:[%s2002_s11 + $0x10] sm:$0xff] %v1205_v55  ;;  %v470_v51 = vld [vmem:[#allocation2 + $0x180] sm:$0xff] }
  0xde   : > { %v1206_v56 = vadd.f32 %v1997_v42, %v910_v52  ;;  %v573_v57 = vpop.f32.mrf.mxu0  ;;  %v471_v52 = vld [vmem:[#allocation2 + $0x188] sm:$0xff] }
  0xdf   : > { %846 = vmatmul.f32.gmra.mxu2 %v458_v53  ;;  %v686_v58 = vpop.f32.mrf.mxu1 }
  0xe0   : > { %959 = vmatmul.f32.gmra.mxu3 %v459_v54  ;;  %1270 = vst [vmem:[%s2002_s11 + $0x18] sm:$0xff] %v1206_v56  ;;  %v687_v59 = vadd.f32 %v686_v58, %v573_v57 }
  0xe1   : > { %620 = vmatmul.f32.gmra.mxu0 %v458_v53 }
  0xe2   : > { %v799_v60 = vpop.f32.mrf.mxu2  ;;  %733 = vmatmul.f32.gmra.mxu1 %v459_v54  ;;  %v1207_v1 = vadd.f32 %v1995_v38, %v687_v59 }
  0xe3   : > { %v912_v61 = vpop.f32.mrf.mxu3 }
  0xe4   : > { %v913_v62 = vadd.f32 %v912_v61, %v799_v60  ;;  %1271 = vst [vmem:[%s2002_s11 + $0x20] sm:$0xff] %v1207_v1  ;;  %v472_v61 = vld [vmem:[#allocation2 + $0x190] sm:$0xff] }
  0xe6   : > { %v1208_v2 = vadd.f32 %v1997_v42, %v913_v62  ;;  %v576_v3 = vpop.f32.mrf.mxu0  ;;  %v473_v62 = vld [vmem:[#allocation2 + $0x198] sm:$0xff] }
  0xe7   : > { %849 = vmatmul.f32.gmra.mxu2 %v460_v63  ;;  %v689_v4 = vpop.f32.mrf.mxu1 }
  0xe8   : > { %962 = vmatmul.f32.gmra.mxu3 %v461_v0  ;;  %1272 = vst [vmem:[%s2002_s11 + $0x28] sm:$0xff] %v1208_v2  ;;  %v690_v5 = vadd.f32 %v689_v4, %v576_v3 }
  0xe9   : > { %623 = vmatmul.f32.gmra.mxu0 %v460_v63 }
  0xea   : > { %v802_v6 = vpop.f32.mrf.mxu2  ;;  %736 = vmatmul.f32.gmra.mxu1 %v461_v0  ;;  %v1209_v11 = vadd.f32 %v1995_v38, %v690_v5 }
  0xeb   : > { %v915_v7 = vpop.f32.mrf.mxu3 }
  0xec   : > { %v916_v8 = vadd.f32 %v915_v7, %v802_v6  ;;  %1273 = vst [vmem:[%s2002_s11 + $0x30] sm:$0xff] %v1209_v11  ;;  %v474_v7 = vld [vmem:[#allocation2 + $0x1a0] sm:$0xff] }
  0xee   : > { %v1210_v12 = vadd.f32 %v1997_v42, %v916_v8  ;;  %v579_v13 = vpop.f32.mrf.mxu0  ;;  %v475_v8 = vld [vmem:[#allocation2 + $0x1a8] sm:$0xff] }
  0xef   : > { %852 = vmatmul.f32.gmra.mxu2 %v462_v9  ;;  %v692_v14 = vpop.f32.mrf.mxu1 }
  0xf0   : > { %965 = vmatmul.f32.gmra.mxu3 %v463_v10  ;;  %1274 = vst [vmem:[%s2002_s11 + $0x38] sm:$0xff] %v1210_v12  ;;  %v693_v15 = vadd.f32 %v692_v14, %v579_v13 }
  0xf1   : > { %626 = vmatmul.f32.gmra.mxu0 %v462_v9 }
  0xf2   : > { %v805_v16 = vpop.f32.mrf.mxu2  ;;  %739 = vmatmul.f32.gmra.mxu1 %v463_v10  ;;  %v1211_v21 = vadd.f32 %v1995_v38, %v693_v15 }
  0xf3   : > { %v918_v17 = vpop.f32.mrf.mxu3 }
  0xf4   : > { %v919_v18 = vadd.f32 %v918_v17, %v805_v16  ;;  %1275 = vst [vmem:[%s2002_s11 + $0x40] sm:$0xff] %v1211_v21  ;;  %v476_v17 = vld [vmem:[#allocation2 + $0x1b0] sm:$0xff] }
  0xf6   : > { %v1212_v22 = vadd.f32 %v1997_v42, %v919_v18  ;;  %v582_v23 = vpop.f32.mrf.mxu0  ;;  %v477_v18 = vld [vmem:[#allocation2 + $0x1b8] sm:$0xff] }
  0xf7   : > { %855 = vmatmul.f32.gmra.mxu2 %v464_v19  ;;  %v695_v24 = vpop.f32.mrf.mxu1 }
  0xf8   : > { %968 = vmatmul.f32.gmra.mxu3 %v465_v20  ;;  %1276 = vst [vmem:[%s2002_s11 + $0x48] sm:$0xff] %v1212_v22  ;;  %v696_v25 = vadd.f32 %v695_v24, %v582_v23 }
  0xf9   : > { %629 = vmatmul.f32.gmra.mxu0 %v464_v19 }
  0xfa   : > { %v808_v26 = vpop.f32.mrf.mxu2  ;;  %742 = vmatmul.f32.gmra.mxu1 %v465_v20  ;;  %v1213_v31 = vadd.f32 %v1995_v38, %v696_v25 }
  0xfb   : > { %v921_v27 = vpop.f32.mrf.mxu3 }
  0xfc   : > { %v922_v28 = vadd.f32 %v921_v27, %v808_v26  ;;  %1277 = vst [vmem:[%s2002_s11 + $0x50] sm:$0xff] %v1213_v31  ;;  %v478_v27 = vld [vmem:[#allocation2 + $0x1c0] sm:$0xff] }
  0xfe   : > { %v1214_v32 = vadd.f32 %v1997_v42, %v922_v28  ;;  %v585_v33 = vpop.f32.mrf.mxu0  ;;  %v479_v28 = vld [vmem:[#allocation2 + $0x1c8] sm:$0xff] }
  0xff   : > { %858 = vmatmul.f32.gmra.mxu2 %v466_v29  ;;  %v698_v34 = vpop.f32.mrf.mxu1 }
 0x100   : > { %971 = vmatmul.f32.gmra.mxu3 %v467_v30  ;;  %1278 = vst [vmem:[%s2002_s11 + $0x58] sm:$0xff] %v1214_v32  ;;  %v699_v35 = vadd.f32 %v698_v34, %v585_v33 }
 0x101   : > { %632 = vmatmul.f32.gmra.mxu0 %v466_v29 }
 0x102   : > { %v811_v36 = vpop.f32.mrf.mxu2  ;;  %745 = vmatmul.f32.gmra.mxu1 %v467_v30  ;;  %v1215_v43 = vadd.f32 %v1995_v38, %v699_v35 }
 0x103   : > { %v924_v37 = vpop.f32.mrf.mxu3 }
 0x104   : > { %v925_v39 = vadd.f32 %v924_v37, %v811_v36  ;;  %1279 = vst [vmem:[%s2002_s11 + $0x60] sm:$0xff] %v1215_v43  ;;  %v480_v37 = vld [vmem:[#allocation2 + $0x1d0] sm:$0xff] }
 0x106   : > { %v1216_v44 = vadd.f32 %v1997_v42, %v925_v39  ;;  %v588_v45 = vpop.f32.mrf.mxu0  ;;  %v481_v39 = vld [vmem:[#allocation2 + $0x1d8] sm:$0xff] }
 0x107   : > { %861 = vmatmul.f32.gmra.mxu2 %v468_v40  ;;  %v701_v46 = vpop.f32.mrf.mxu1 }
 0x108   : > { %974 = vmatmul.f32.gmra.mxu3 %v469_v41  ;;  %1280 = vst [vmem:[%s2002_s11 + $0x68] sm:$0xff] %v1216_v44  ;;  %v702_v47 = vadd.f32 %v701_v46, %v588_v45 }
 0x109   : > { %635 = vmatmul.f32.gmra.mxu0 %v468_v40 }
 0x10a   : > { %v814_v48 = vpop.f32.mrf.mxu2  ;;  %748 = vmatmul.f32.gmra.mxu1 %v469_v41  ;;  %v1217_v53 = vadd.f32 %v1995_v38, %v702_v47 }
 0x10b   : > { %v927_v49 = vpop.f32.mrf.mxu3 }
 0x10c   : > { %v928_v50 = vadd.f32 %v927_v49, %v814_v48  ;;  %1281 = vst [vmem:[%s2002_s11 + $0x70] sm:$0xff] %v1217_v53  ;;  %v482_v49 = vld [vmem:[#allocation2 + $0x1e0] sm:$0xff] }
 0x10e   : > { %v1218_v54 = vadd.f32 %v1997_v42, %v928_v50  ;;  %v591_v55 = vpop.f32.mrf.mxu0  ;;  %v483_v50 = vld [vmem:[#allocation2 + $0x1e8] sm:$0xff] }
 0x10f   : > { %864 = vmatmul.f32.gmra.mxu2 %v470_v51  ;;  %v704_v56 = vpop.f32.mrf.mxu1 }
 0x110   : > { %977 = vmatmul.f32.gmra.mxu3 %v471_v52  ;;  %1282 = vst [vmem:[%s2002_s11 + $0x78] sm:$0xff] %v1218_v54  ;;  %v705_v57 = vadd.f32 %v704_v56, %v591_v55 }
 0x111   : > { %638 = vmatmul.f32.gmra.mxu0 %v470_v51 }
 0x112   : > { %v817_v58 = vpop.f32.mrf.mxu2  ;;  %751 = vmatmul.f32.gmra.mxu1 %v471_v52  ;;  %v1219_v63 = vadd.f32 %v1995_v38, %v705_v57 }
 0x113   : > { %v930_v59 = vpop.f32.mrf.mxu3 }
 0x114   : > { %v931_v60 = vadd.f32 %v930_v59, %v817_v58  ;;  %1283 = vst [vmem:[%s2002_s11 + $0x80] sm:$0xff] %v1219_v63  ;;  %v484_v59 = vld [vmem:[#allocation2 + $0x1f0] sm:$0xff] }
 0x116   : > { %v1220_v0 = vadd.f32 %v1997_v42, %v931_v60  ;;  %v594_v1 = vpop.f32.mrf.mxu0  ;;  %v485_v60 = vld [vmem:[#allocation2 + $0x1f8] sm:$0xff] }
 0x117   : > { %867 = vmatmul.f32.gmra.mxu2 %v472_v61  ;;  %v707_v2 = vpop.f32.mrf.mxu1 }
 0x118   : > { %980 = vmatmul.f32.gmra.mxu3 %v473_v62  ;;  %1284 = vst [vmem:[%s2002_s11 + $0x88] sm:$0xff] %v1220_v0  ;;  %v708_v3 = vadd.f32 %v707_v2, %v594_v1 }
 0x119   : > { %641 = vmatmul.f32.gmra.mxu0 %v472_v61 }
 0x11a   : > { %v820_v4 = vpop.f32.mrf.mxu2  ;;  %754 = vmatmul.f32.gmra.mxu1 %v473_v62  ;;  %v1221_v9 = vadd.f32 %v1995_v38, %v708_v3 }
 0x11b   : > { %v933_v5 = vpop.f32.mrf.mxu3 }
 0x11c   : > { %v934_v6 = vadd.f32 %v933_v5, %v820_v4  ;;  %1285 = vst [vmem:[%s2002_s11 + $0x90] sm:$0xff] %v1221_v9 }
 0x11e   : > { %v1222_v10 = vadd.f32 %v1997_v42, %v934_v6  ;;  %v597_v11 = vpop.f32.mrf.mxu0 }
 0x11f   : > { %870 = vmatmul.f32.gmra.mxu2 %v474_v7  ;;  %v710_v12 = vpop.f32.mrf.mxu1 }
 0x120   : > { %983 = vmatmul.f32.gmra.mxu3 %v475_v8  ;;  %1286 = vst [vmem:[%s2002_s11 + $0x98] sm:$0xff] %v1222_v10  ;;  %v711_v13 = vadd.f32 %v710_v12, %v597_v11 }
 0x121   : > { %644 = vmatmul.f32.gmra.mxu0 %v474_v7 }
 0x122   : > { %v823_v14 = vpop.f32.mrf.mxu2  ;;  %757 = vmatmul.f32.gmra.mxu1 %v475_v8  ;;  %v1223_v19 = vadd.f32 %v1995_v38, %v711_v13 }
 0x123   : > { %v936_v15 = vpop.f32.mrf.mxu3 }
 0x124   : > { %v937_v16 = vadd.f32 %v936_v15, %v823_v14  ;;  %1287 = vst [vmem:[%s2002_s11 + $0xa0] sm:$0xff] %v1223_v19 }
 0x126   : > { %v1224_v20 = vadd.f32 %v1997_v42, %v937_v16  ;;  %v600_v21 = vpop.f32.mrf.mxu0 }
 0x127   : > { %873 = vmatmul.f32.gmra.mxu2 %v476_v17  ;;  %v713_v22 = vpop.f32.mrf.mxu1 }
 0x128   : > { %986 = vmatmul.f32.gmra.mxu3 %v477_v18  ;;  %1288 = vst [vmem:[%s2002_s11 + $0xa8] sm:$0xff] %v1224_v20  ;;  %v714_v23 = vadd.f32 %v713_v22, %v600_v21 }
 0x129   : > { %647 = vmatmul.f32.gmra.mxu0 %v476_v17 }
 0x12a   : > { %v826_v24 = vpop.f32.mrf.mxu2  ;;  %760 = vmatmul.f32.gmra.mxu1 %v477_v18  ;;  %v1225_v29 = vadd.f32 %v1995_v38, %v714_v23 }
 0x12b   : > { %v939_v25 = vpop.f32.mrf.mxu3 }
 0x12c   : > { %v940_v26 = vadd.f32 %v939_v25, %v826_v24  ;;  %1289 = vst [vmem:[%s2002_s11 + $0xb0] sm:$0xff] %v1225_v29 }
 0x12e   : > { %v1226_v30 = vadd.f32 %v1997_v42, %v940_v26  ;;  %v603_v31 = vpop.f32.mrf.mxu0 }
 0x12f   : > { %876 = vmatmul.f32.gmra.mxu2 %v478_v27  ;;  %v716_v32 = vpop.f32.mrf.mxu1 }
 0x130   : > { %989 = vmatmul.f32.gmra.mxu3 %v479_v28  ;;  %1290 = vst [vmem:[%s2002_s11 + $0xb8] sm:$0xff] %v1226_v30  ;;  %v717_v33 = vadd.f32 %v716_v32, %v603_v31 }
 0x131   : > { %650 = vmatmul.f32.gmra.mxu0 %v478_v27 }
 0x132   : > { %v829_v34 = vpop.f32.mrf.mxu2  ;;  %763 = vmatmul.f32.gmra.mxu1 %v479_v28  ;;  %v1227_v40 = vadd.f32 %v1995_v38, %v717_v33 }
 0x133   : > { %v942_v35 = vpop.f32.mrf.mxu3 }
 0x134   : > { %v943_v36 = vadd.f32 %v942_v35, %v829_v34  ;;  %1291 = vst [vmem:[%s2002_s11 + $0xc0] sm:$0xff] %v1227_v40 }
 0x136   : > { %v1228_v41 = vadd.f32 %v1997_v42, %v943_v36  ;;  %v606_v43 = vpop.f32.mrf.mxu0 }
 0x137   : > { %879 = vmatmul.f32.gmra.mxu2 %v480_v37  ;;  %v719_v44 = vpop.f32.mrf.mxu1 }
 0x138   : > { %992 = vmatmul.f32.gmra.mxu3 %v481_v39  ;;  %1292 = vst [vmem:[%s2002_s11 + $0xc8] sm:$0xff] %v1228_v41  ;;  %v720_v45 = vadd.f32 %v719_v44, %v606_v43 }
 0x139   : > { %653 = vmatmul.f32.gmra.mxu0 %v480_v37 }
 0x13a   : > { %v832_v46 = vpop.f32.mrf.mxu2  ;;  %766 = vmatmul.f32.gmra.mxu1 %v481_v39  ;;  %v1229_v51 = vadd.f32 %v1995_v38, %v720_v45 }
 0x13b   : > { %v945_v47 = vpop.f32.mrf.mxu3 }
 0x13c   : > { %v946_v48 = vadd.f32 %v945_v47, %v832_v46  ;;  %1293 = vst [vmem:[%s2002_s11 + $0xd0] sm:$0xff] %v1229_v51 }
 0x13e   : > { %v1230_v52 = vadd.f32 %v1997_v42, %v946_v48  ;;  %v609_v53 = vpop.f32.mrf.mxu0 }
 0x13f   : > { %882 = vmatmul.f32.gmra.mxu2 %v482_v49  ;;  %v722_v54 = vpop.f32.mrf.mxu1 }
 0x140   : > { %995 = vmatmul.f32.gmra.mxu3 %v483_v50  ;;  %1294 = vst [vmem:[%s2002_s11 + $0xd8] sm:$0xff] %v1230_v52  ;;  %v723_v55 = vadd.f32 %v722_v54, %v609_v53 }
 0x141   : > { %656 = vmatmul.f32.gmra.mxu0 %v482_v49 }
 0x142   : > { %v835_v56 = vpop.f32.mrf.mxu2  ;;  %769 = vmatmul.f32.gmra.mxu1 %v483_v50  ;;  %v1231_v61 = vadd.f32 %v1995_v38, %v723_v55 }
 0x143   : > { %v948_v57 = vpop.f32.mrf.mxu3 }
 0x144   : > { %v949_v58 = vadd.f32 %v948_v57, %v835_v56  ;;  %1295 = vst [vmem:[%s2002_s11 + $0xe0] sm:$0xff] %v1231_v61 }
 0x146   : > { %v1232_v62 = vadd.f32 %v1997_v42, %v949_v58  ;;  %v612_v63 = vpop.f32.mrf.mxu0 }
 0x147   : > { %885 = vmatmul.f32.gmra.mxu2 %v484_v59  ;;  %v725_v0 = vpop.f32.mrf.mxu1 }
 0x148   : > { %998 = vmatmul.f32.gmra.mxu3 %v485_v60  ;;  %1296 = vst [vmem:[%s2002_s11 + $0xe8] sm:$0xff] %v1232_v62  ;;  %v726_v1 = vadd.f32 %v725_v0, %v612_v63 }
 0x149   : > { %659 = vmatmul.f32.gmra.mxu0 %v484_v59 }
 0x14a   : > { %v838_v2 = vpop.f32.mrf.mxu2  ;;  %772 = vmatmul.f32.gmra.mxu1 %v485_v60  ;;  %v1233_v5 = vadd.f32 %v1995_v38, %v726_v1 }
 0x14b   : > { %v951_v3 = vpop.f32.mrf.mxu3 }
 0x14c   : > { %v952_v4 = vadd.f32 %v951_v3, %v838_v2  ;;  %1297 = vst [vmem:[%s2002_s11 + $0xf0] sm:$0xff] %v1233_v5 }
 0x14e   : > { %v1234_v6 = vadd.f32 %v1997_v42, %v952_v4  ;;  %v615_v7 = vpop.f32.mrf.mxu0 }
 0x14f   : > { %v728_v8 = vpop.f32.mrf.mxu1 }
 0x150   : > { %1298 = vst [vmem:[%s2002_s11 + $0xf8] sm:$0xff] %v1234_v6  ;;  %v729_v9 = vadd.f32 %v728_v8, %v615_v7 }
 0x152   : > { %v841_v10 = vpop.f32.mrf.mxu2  ;;  %v1235_v13 = vadd.f32 %v1995_v38, %v729_v9 }
 0x153   : > { %v954_v11 = vpop.f32.mrf.mxu3 }
 0x154   : > { %v955_v12 = vadd.f32 %v954_v11, %v841_v10  ;;  %1299 = vst [vmem:[%s2002_s11 + $0x100] sm:$0xff] %v1235_v13 }
 0x156   : > { %v1236_v14 = vadd.f32 %v1997_v42, %v955_v12  ;;  %v618_v15 = vpop.f32.mrf.mxu0 }
 0x157   : > { %v731_v16 = vpop.f32.mrf.mxu1 }
 0x158   : > { %1300 = vst [vmem:[%s2002_s11 + $0x108] sm:$0xff] %v1236_v14  ;;  %v732_v17 = vadd.f32 %v731_v16, %v618_v15 }
 0x15a   : > { %v844_v18 = vpop.f32.mrf.mxu2  ;;  %v1237_v21 = vadd.f32 %v1995_v38, %v732_v17 }
 0x15b   : > { %v957_v19 = vpop.f32.mrf.mxu3 }
 0x15c   : > { %v958_v20 = vadd.f32 %v957_v19, %v844_v18  ;;  %1301 = vst [vmem:[%s2002_s11 + $0x110] sm:$0xff] %v1237_v21 }
 0x15e   : > { %v1238_v22 = vadd.f32 %v1997_v42, %v958_v20  ;;  %v621_v23 = vpop.f32.mrf.mxu0 }
 0x15f   : > { %v734_v24 = vpop.f32.mrf.mxu1 }
 0x160   : > { %1302 = vst [vmem:[%s2002_s11 + $0x118] sm:$0xff] %v1238_v22  ;;  %v735_v25 = vadd.f32 %v734_v24, %v621_v23 }
 0x162   : > { %v847_v26 = vpop.f32.mrf.mxu2  ;;  %v1239_v29 = vadd.f32 %v1995_v38, %v735_v25 }
 0x163   : > { %v960_v27 = vpop.f32.mrf.mxu3 }
 0x164   : > { %v961_v28 = vadd.f32 %v960_v27, %v847_v26  ;;  %1303 = vst [vmem:[%s2002_s11 + $0x120] sm:$0xff] %v1239_v29 }
 0x166   : > { %v1240_v30 = vadd.f32 %v1997_v42, %v961_v28  ;;  %v624_v31 = vpop.f32.mrf.mxu0 }
 0x167   : > { %v737_v32 = vpop.f32.mrf.mxu1 }
 0x168   : > { %1304 = vst [vmem:[%s2002_s11 + $0x128] sm:$0xff] %v1240_v30  ;;  %v738_v33 = vadd.f32 %v737_v32, %v624_v31 }
 0x16a   : > { %v850_v34 = vpop.f32.mrf.mxu2  ;;  %v1241_v37 = vadd.f32 %v1995_v38, %v738_v33 }
 0x16b   : > { %v963_v35 = vpop.f32.mrf.mxu3 }
 0x16c   : > { %v964_v36 = vadd.f32 %v963_v35, %v850_v34  ;;  %1305 = vst [vmem:[%s2002_s11 + $0x130] sm:$0xff] %v1241_v37 }
 0x16e   : > { %v1242_v39 = vadd.f32 %v1997_v42, %v964_v36  ;;  %v627_v40 = vpop.f32.mrf.mxu0 }
 0x16f   : > { %v740_v41 = vpop.f32.mrf.mxu1 }
 0x170   : > { %1306 = vst [vmem:[%s2002_s11 + $0x138] sm:$0xff] %v1242_v39  ;;  %v741_v43 = vadd.f32 %v740_v41, %v627_v40 }
 0x172   : > { %v853_v44 = vpop.f32.mrf.mxu2  ;;  %v1243_v47 = vadd.f32 %v1995_v38, %v741_v43 }
 0x173   : > { %v966_v45 = vpop.f32.mrf.mxu3 }
 0x174   : > { %v967_v46 = vadd.f32 %v966_v45, %v853_v44  ;;  %1307 = vst [vmem:[%s2002_s11 + $0x140] sm:$0xff] %v1243_v47 }
 0x176   : > { %v1244_v48 = vadd.f32 %v1997_v42, %v967_v46  ;;  %v630_v49 = vpop.f32.mrf.mxu0 }
 0x177   : > { %v743_v50 = vpop.f32.mrf.mxu1 }
 0x178   : > { %1308 = vst [vmem:[%s2002_s11 + $0x148] sm:$0xff] %v1244_v48  ;;  %v744_v51 = vadd.f32 %v743_v50, %v630_v49 }
 0x17a   : > { %v856_v52 = vpop.f32.mrf.mxu2  ;;  %v1245_v55 = vadd.f32 %v1995_v38, %v744_v51 }
 0x17b   : > { %v969_v53 = vpop.f32.mrf.mxu3 }
 0x17c   : > { %v970_v54 = vadd.f32 %v969_v53, %v856_v52  ;;  %1309 = vst [vmem:[%s2002_s11 + $0x150] sm:$0xff] %v1245_v55 }
 0x17e   : > { %v1246_v56 = vadd.f32 %v1997_v42, %v970_v54  ;;  %v633_v57 = vpop.f32.mrf.mxu0 }
 0x17f   : > { %v746_v58 = vpop.f32.mrf.mxu1 }
 0x180   : > { %1310 = vst [vmem:[%s2002_s11 + $0x158] sm:$0xff] %v1246_v56  ;;  %v747_v59 = vadd.f32 %v746_v58, %v633_v57 }
 0x182   : > { %v859_v60 = vpop.f32.mrf.mxu2  ;;  %v1247_v63 = vadd.f32 %v1995_v38, %v747_v59 }
 0x183   : > { %v972_v61 = vpop.f32.mrf.mxu3 }
 0x184   : > { %v973_v62 = vadd.f32 %v972_v61, %v859_v60  ;;  %1311 = vst [vmem:[%s2002_s11 + $0x160] sm:$0xff] %v1247_v63 }
 0x186   : > { %v1248_v0 = vadd.f32 %v1997_v42, %v973_v62  ;;  %v636_v1 = vpop.f32.mrf.mxu0 }
 0x187   : > { %v749_v2 = vpop.f32.mrf.mxu1 }
 0x188   : > { %1312 = vst [vmem:[%s2002_s11 + $0x168] sm:$0xff] %v1248_v0  ;;  %v750_v3 = vadd.f32 %v749_v2, %v636_v1 }
 0x18a   : > { %v862_v4 = vpop.f32.mrf.mxu2  ;;  %v1249_v7 = vadd.f32 %v1995_v38, %v750_v3 }
 0x18b   : > { %v975_v5 = vpop.f32.mrf.mxu3 }
 0x18c   : > { %v976_v6 = vadd.f32 %v975_v5, %v862_v4  ;;  %1313 = vst [vmem:[%s2002_s11 + $0x170] sm:$0xff] %v1249_v7 }
 0x18e   : > { %v1250_v8 = vadd.f32 %v1997_v42, %v976_v6  ;;  %v639_v9 = vpop.f32.mrf.mxu0 }
 0x18f   : > { %v752_v10 = vpop.f32.mrf.mxu1 }
 0x190   : > { %1314 = vst [vmem:[%s2002_s11 + $0x178] sm:$0xff] %v1250_v8  ;;  %v753_v11 = vadd.f32 %v752_v10, %v639_v9 }
 0x192   : > { %v865_v12 = vpop.f32.mrf.mxu2  ;;  %v1251_v15 = vadd.f32 %v1995_v38, %v753_v11 }
 0x193   : > { %v978_v13 = vpop.f32.mrf.mxu3 }
 0x194   : > { %v979_v14 = vadd.f32 %v978_v13, %v865_v12  ;;  %1315 = vst [vmem:[%s2002_s11 + $0x180] sm:$0xff] %v1251_v15 }
 0x196   : > { %v1252_v16 = vadd.f32 %v1997_v42, %v979_v14  ;;  %v642_v17 = vpop.f32.mrf.mxu0 }
 0x197   : > { %v755_v18 = vpop.f32.mrf.mxu1 }
 0x198   : > { %1316 = vst [vmem:[%s2002_s11 + $0x188] sm:$0xff] %v1252_v16  ;;  %v756_v19 = vadd.f32 %v755_v18, %v642_v17 }
 0x19a   : > { %v868_v20 = vpop.f32.mrf.mxu2  ;;  %v1253_v23 = vadd.f32 %v1995_v38, %v756_v19 }
 0x19b   : > { %v981_v21 = vpop.f32.mrf.mxu3 }
 0x19c   : > { %v982_v22 = vadd.f32 %v981_v21, %v868_v20  ;;  %1317 = vst [vmem:[%s2002_s11 + $0x190] sm:$0xff] %v1253_v23 }
 0x19e   : > { %v1254_v24 = vadd.f32 %v1997_v42, %v982_v22  ;;  %v645_v25 = vpop.f32.mrf.mxu0 }
 0x19f   : > { %v758_v26 = vpop.f32.mrf.mxu1 }
 0x1a0   : > { %1318 = vst [vmem:[%s2002_s11 + $0x198] sm:$0xff] %v1254_v24  ;;  %v759_v27 = vadd.f32 %v758_v26, %v645_v25 }
 0x1a2   : > { %v871_v28 = vpop.f32.mrf.mxu2  ;;  %v1255_v31 = vadd.f32 %v1995_v38, %v759_v27 }
 0x1a3   : > { %v984_v29 = vpop.f32.mrf.mxu3 }
 0x1a4   : > { %v985_v30 = vadd.f32 %v984_v29, %v871_v28  ;;  %1319 = vst [vmem:[%s2002_s11 + $0x1a0] sm:$0xff] %v1255_v31 }
 0x1a6   : > { %v1256_v32 = vadd.f32 %v1997_v42, %v985_v30  ;;  %v648_v33 = vpop.f32.mrf.mxu0 }
 0x1a7   : > { %v761_v34 = vpop.f32.mrf.mxu1 }
 0x1a8   : > { %1320 = vst [vmem:[%s2002_s11 + $0x1a8] sm:$0xff] %v1256_v32  ;;  %v762_v35 = vadd.f32 %v761_v34, %v648_v33 }
 0x1aa   : > { %v874_v36 = vpop.f32.mrf.mxu2  ;;  %v1257_v40 = vadd.f32 %v1995_v38, %v762_v35 }
 0x1ab   : > { %v987_v37 = vpop.f32.mrf.mxu3 }
 0x1ac   : > { %v988_v39 = vadd.f32 %v987_v37, %v874_v36  ;;  %1321 = vst [vmem:[%s2002_s11 + $0x1b0] sm:$0xff] %v1257_v40 }
 0x1ae   : > { %v1258_v41 = vadd.f32 %v1997_v42, %v988_v39  ;;  %v651_v43 = vpop.f32.mrf.mxu0 }
 0x1af   : > { %v764_v44 = vpop.f32.mrf.mxu1 }
 0x1b0   : > { %1322 = vst [vmem:[%s2002_s11 + $0x1b8] sm:$0xff] %v1258_v41  ;;  %v765_v45 = vadd.f32 %v764_v44, %v651_v43 }
 0x1b2   : > { %v877_v46 = vpop.f32.mrf.mxu2  ;;  %v1259_v49 = vadd.f32 %v1995_v38, %v765_v45 }
 0x1b3   : > { %v990_v47 = vpop.f32.mrf.mxu3 }
 0x1b4   : > { %v991_v48 = vadd.f32 %v990_v47, %v877_v46  ;;  %1323 = vst [vmem:[%s2002_s11 + $0x1c0] sm:$0xff] %v1259_v49 }
 0x1b6   : > { %v1260_v50 = vadd.f32 %v1997_v42, %v991_v48  ;;  %v654_v51 = vpop.f32.mrf.mxu0 }
 0x1b7   : > { %v767_v52 = vpop.f32.mrf.mxu1 }
 0x1b8   : > { %1324 = vst [vmem:[%s2002_s11 + $0x1c8] sm:$0xff] %v1260_v50  ;;  %v768_v53 = vadd.f32 %v767_v52, %v654_v51 }
 0x1ba   : > { %v880_v54 = vpop.f32.mrf.mxu2  ;;  %v1261_v57 = vadd.f32 %v1995_v38, %v768_v53 }
 0x1bb   : > { %v993_v55 = vpop.f32.mrf.mxu3 }
 0x1bc   : > { %v994_v56 = vadd.f32 %v993_v55, %v880_v54  ;;  %1325 = vst [vmem:[%s2002_s11 + $0x1d0] sm:$0xff] %v1261_v57 }
 0x1be   : > { %v1262_v58 = vadd.f32 %v1997_v42, %v994_v56  ;;  %v657_v59 = vpop.f32.mrf.mxu0 }
 0x1bf   : > { %v770_v60 = vpop.f32.mrf.mxu1 }
 0x1c0   : > { %1326 = vst [vmem:[%s2002_s11 + $0x1d8] sm:$0xff] %v1262_v58  ;;  %v771_v61 = vadd.f32 %v770_v60, %v657_v59 }
 0x1c2   : > { %v883_v62 = vpop.f32.mrf.mxu2  ;;  %v1263_v1 = vadd.f32 %v1995_v38, %v771_v61 }
 0x1c3   : > { %v996_v63 = vpop.f32.mrf.mxu3 }
 0x1c4   : > { %v997_v0 = vadd.f32 %v996_v63, %v883_v62  ;;  %1327 = vst [vmem:[%s2002_s11 + $0x1e0] sm:$0xff] %v1263_v1 }
 0x1c6   : > { %v1264_v2 = vadd.f32 %v1997_v42, %v997_v0  ;;  %v660_v3 = vpop.f32.mrf.mxu0 }
 0x1c7   : > { %v773_v4 = vpop.f32.mrf.mxu1 }
 0x1c8   : > { %1328 = vst [vmem:[%s2002_s11 + $0x1e8] sm:$0xff] %v1264_v2  ;;  %v774_v5 = vadd.f32 %v773_v4, %v660_v3 }
 0x1ca   : > { %v886_v6 = vpop.f32.mrf.mxu2  ;;  %v1265_v9 = vadd.f32 %v1995_v38, %v774_v5 }
 0x1cb   : > { %v999_v7 = vpop.f32.mrf.mxu3 }
 0x1cc   : > { %v1000_v8 = vadd.f32 %v999_v7, %v886_v6  ;;  %1329 = vst [vmem:[%s2002_s11 + $0x1f0] sm:$0xff] %v1265_v9 }
 0x1ce   : > { %v1266_v10 = vadd.f32 %v1997_v42, %v1000_v8 }
 0x1d0   : > { %1330 = vst [vmem:[%s2002_s11 + $0x1f8] sm:$0xff] %v1266_v10 }
 0x1d1   : > { %1701 = shalt.err (!%p1698_p13)
}
 0x1d2   : > { %s1766_s9 = smov 256   ;;  %s1767_s1 = smov 512  }
 0x1d3   : > { %s1768_s6 = smov 16  }
 0x1d4   : > { %1507 = dma.vmem_to_hbm [thread:$0]  (%p1879_p0), %s1348_s30, 8192, %s1350_s15, %s1332_s4, %s1766_s9, %s1767_s1, %s1768_s6  }
 0x1d5 PF: > { %s1364_s7 = sand.u32 1, %s1740_s12   ;;  %p1521_p3 = pnand %p1481_p4, %p1883_p2 }
 0x1d6   : > { %s1365_s10 = scalar_lea.sflag [#allocation4], %s1364_s7 }
 0x1d7   : > { %p1522_p5 = pneg %p1521_p3 }
 0x1d9   : > { %1735 = dma.done.wait (%p1522_p5), %s1365_s10, 8192  }
 0x1da   : > { %1737 = vsyncadd (%p1522_p5), %s1365_s10, 4294959104  ;;  %s20_s17 = sadd.s32 1, %s1760_s17   ;;  %s2188_s12 = smov %s1744_s13 }
 0x1db   : > { %p17_p1 = scmp.ge.s32.totalorder %s20_s17, 4   ;;  %s2189_s13 = smov %s1748_s14 }
 0x1dc   : > { %s2190_s14 = smov %s1840_s24  ;;  %s2191_s15 = smov %s1756_s16 }
 0x1dd   : > { %s2192_s16 = smov %s2194_s18  ;;  %19 = sbr.rel (!%p17_p1) target bundleno = 10 (0xa), region = 102 }
 0x1e2   :  { %1371 = vsyncpa [#allocation3], 1 }
 0x1e3   :  { %1373 = vsyncpa [#allocation3 + $0x1], 1 }
 0x1e4   :  { %1374 = vsyncpa [#allocation6], 1 }
 0x1e5   :  { %1376 = vsyncpa [#allocation6 + $0x1], 1 }
 0x1e6   :  { %1377 = vsyncpa [#allocation4], 1 }
 0x1e7   :  { %1379 = vsyncpa [#allocation4 + $0x1], 1 }

</bundles_post_ra>
